<compile_context>
chip_gen: v7x
topology: tpu7x:2x2x1
jax: 0.10.0
libtpu: 0.0.40
codegen_flags: <defaults>
</compile_context>

<pallas_src>
import functools

import jax
import jax.numpy as jnp
import numpy as np
from jax.experimental import pallas as pl
from jax.experimental.pallas import tpu as pltpu


def _layer_norm(y, gamma, beta, eps):
    # Fused single-pass LN: the sum and sum-of-squares reductions are independent so
    # Mosaic can overlap them; all math stays in f32.
    inv_c = 1.0 / y.shape[-1]
    s1 = jnp.sum(y, axis=-1, keepdims=True)
    s2 = jnp.sum(y * y, axis=-1, keepdims=True)
    mu = s1 * inv_c
    var = jnp.maximum(s2 * inv_c - mu * mu, 0.0)
    return (y - mu) * jax.lax.rsqrt(var + eps) * gamma + beta


def _gelu_exact(h):
    # nn.GELU default (approximate='none') -> erf-based GELU, kept exact to match PyTorch.
    return 0.5 * h * (1.0 + jax.lax.erf(h * 0.7071067811865476))


def res_post_block_kernel(
    x_ref,
    wqkv_ref, wproj_ref, bproj_ref,
    g1_ref, b1_ref,
    wfc1_ref, bfc1_ref, wfc2_ref, bfc2_ref,
    g2_ref, b2_ref,
    o_ref,
    attn_scratch,
    *, num_heads, head_dim, eps,
):
    x = x_ref[...]                                   # (N, C) f32 (batch dim squeezed)
    C = num_heads * head_dim
    scale = jnp.float32(head_dim ** -0.5)

    # bf16 MXU inputs, f32 accumulation.
    x_bf = x.astype(jnp.bfloat16)
    qkv = jnp.dot(x_bf, wqkv_ref[...], preferred_element_type=jnp.float32)   # (N, 3C) f32

    # ---- Attention ----------------------------------------------------------
    # Static unroll over heads; each head's output lands directly in the VMEM scratch
    # slab (no concatenate / lane shuffle at the end).
    for h in range(num_heads):
        lo, hi = h * head_dim, (h + 1) * head_dim
        q = (qkv[:, lo:hi] * scale).astype(jnp.bfloat16)               # (N, hd)
        k = qkv[:, C + lo:C + hi].astype(jnp.bfloat16)                 # (N, hd)
        v = qkv[:, 2 * C + lo:2 * C + hi].astype(jnp.bfloat16)         # (N, hd)

        # q @ k^T without materializing k^T: contract the last dim of both operands.
        s = jax.lax.dot_general(q, k, (((1,), (1,)), ((), ())),
                                preferred_element_type=jnp.float32)    # (N, N) f32
        s = s - jnp.max(s, axis=-1, keepdims=True)
        p = jnp.exp(s)
        # Fold 1/rowsum into the small (N, hd) output; approx reciprocal -> EUP slot.
        inv = pl.reciprocal(jnp.sum(p, axis=-1, keepdims=True), approx=True)
        o_h = jnp.dot(p.astype(jnp.bfloat16), v,
                      preferred_element_type=jnp.float32)              # (N, hd) f32
        attn_scratch[:, lo:hi] = o_h * inv

    attn = (jnp.dot(attn_scratch[...].astype(jnp.bfloat16), wproj_ref[...],
                    preferred_element_type=jnp.float32) + bproj_ref[...])

    # residual 1: x + norm1(attn(x))
    x1 = x + _layer_norm(attn, g1_ref[...], b1_ref[...], eps)

    # ---- MLP ----------------------------------------------------------------
    h1 = (jnp.dot(x1.astype(jnp.bfloat16), wfc1_ref[...],
                  preferred_element_type=jnp.float32) + bfc1_ref[...])
    h1 = _gelu_exact(h1)
    h2 = (jnp.dot(h1.astype(jnp.bfloat16), wfc2_ref[...],
                  preferred_element_type=jnp.float32) + bfc2_ref[...])

    # residual 2: x1 + norm2(mlp(x1))
    x2 = x1 + _layer_norm(h2, g2_ref[...], b2_ref[...], eps)

    o_ref[...] = x2.astype(o_ref.dtype)


def _vmem_limit_bytes(N, C, hidden):
    """Explicit VMEM budget: bf16 weights + f32 activations, generous margin."""
    bf16, f32 = 2, 4
    weights = (3 * C * C + C * C + 2 * C * hidden) * bf16         # qkv, proj, fc1, fc2
    vecs = (6 * C + hidden) * f32                                 # biases / gammas / betas
    io_blocks = 2 * N * C * f32                                   # x block + out block
    acts = (3 * N * C + 2 * N * N + N * hidden + 6 * N * C) * f32 # qkv, scores, h1, misc
    est = 2 * (weights + vecs + io_blocks) + 2 * acts + (8 << 20)
    # Raise above the small default scoped limits (16 MiB v5e / 32 MiB v6e,v7x) but stay
    # within every chip's physical VMEM (64 MiB on v7x).
    return int(min(max(est, 32 << 20), 64 << 20))


def res_post_block(x, params, *, num_heads, eps=1e-5):
    B, N, C = x.shape
    head_dim = C // num_heads
    hidden = params["wfc1_t"].shape[1]

    param_list = [
        params["wqkv_t"], params["wproj_t"], params["bproj"],
        params["g1"], params["b1"],
        params["wfc1_t"], params["bfc1"], params["wfc2_t"], params["bfc2"],
        params["g2"], params["b2"],
    ]

    # x: one batch element per grid step; the leading batch dim is squeezed out of the
    # kernel view (block dim None).
    in_specs = [pl.BlockSpec((None, N, C), lambda b: (b, 0, 0))]
    # Grid-invariant parameters: whole-array blocks with a constant index map, so they
    # are copied to VMEM once and not re-DMA'd across grid steps.
    # Note: pipeline_mode=pl.Buffered(1) would also drop their second (unused) pipeline
    # buffer; omitted here to stay on the conservative, known-good API surface.
    for p in param_list:
        in_specs.append(pl.BlockSpec(p.shape, lambda b, _n=p.ndim: (0,) * _n))

    kernel = functools.partial(
        res_post_block_kernel, num_heads=num_heads, head_dim=head_dim, eps=eps
    )

    return pl.pallas_call(
        kernel,
        out_shape=jax.ShapeDtypeStruct((B, N, C), x.dtype),
        grid=(B,),
        in_specs=in_specs,
        out_specs=pl.BlockSpec((None, N, C), lambda b: (b, 0, 0)),
        scratch_shapes=[pltpu.VMEM((N, C), jnp.float32)],   # attention output slab
        compiler_params=pltpu.CompilerParams(
            dimension_semantics=("parallel",),              # shards batch across TCs on v7x
            vmem_limit_bytes=_vmem_limit_bytes(N, C, hidden),
        ),
    )(x, *param_list)


def ref_forward(x, p, num_heads, eps=1e-5):
    """Pure-JAX f32 reference (mirrors the PyTorch module exactly)."""
    B, N, C = x.shape
    hd = C // num_heads

    def ln(y, g, b):
        mu = y.mean(-1, keepdims=True)
        var = ((y - mu) ** 2).mean(-1, keepdims=True)
        return (y - mu) / jnp.sqrt(var + eps) * g + b

    qkv = x @ p["wqkv_t"].astype(jnp.float32)                   # (B, N, 3C)
    qkv = qkv.reshape(B, N, 3, num_heads, hd).transpose(2, 0, 3, 1, 4)
    q, k, v = qkv[0], qkv[1], qkv[2]                            # (B, H, N, hd)
    s = (q * hd ** -0.5) @ jnp.swapaxes(k, -1, -2)
    a = jax.nn.softmax(s, axis=-1)
    o = a @ v
    o = jnp.transpose(o, (0, 2, 1, 3)).reshape(B, N, C)
    o = o @ p["wproj_t"].astype(jnp.float32) + p["bproj"]
    x1 = x + ln(o, p["g1"], p["b1"])

    h = x1 @ p["wfc1_t"].astype(jnp.float32) + p["bfc1"]
    h = 0.5 * h * (1.0 + jax.lax.erf(h / jnp.sqrt(2.0)))
    h = h @ p["wfc2_t"].astype(jnp.float32) + p["bfc2"]
    return x1 + ln(h, p["g2"], p["b2"])


def init_params(key, dim, num_heads, mlp_ratio=4.0):
    hidden = int(dim * mlp_ratio)
    ks = jax.random.split(key, 5)
    std = 0.02
    params = {
        # qkv: Linear(dim, 3*dim, bias=False); stored transposed -> (C, 3C), bf16 for the MXU.
        "wqkv_t": (jax.random.normal(ks[0], (dim, 3 * dim), jnp.float32) * std).astype(jnp.bfloat16),
        # proj: Linear(dim, dim); transposed -> (C, C)
        "wproj_t": (jax.random.normal(ks[1], (dim, dim), jnp.float32) * std).astype(jnp.bfloat16),
        "bproj": jnp.zeros((1, dim), jnp.float32),
        # norm1 (init_values=None -> default ones/zeros)
        "g1": jnp.ones((1, dim), jnp.float32),
        "b1": jnp.zeros((1, dim), jnp.float32),
        # mlp fc1 / fc2, transposed, bf16
        "wfc1_t": (jax.random.normal(ks[2], (dim, hidden), jnp.float32) * std).astype(jnp.bfloat16),
        "bfc1": jnp.zeros((1, hidden), jnp.float32),
        "wfc2_t": (jax.random.normal(ks[3], (hidden, dim), jnp.float32) * std).astype(jnp.bfloat16),
        "bfc2": jnp.zeros((1, dim), jnp.float32),
        # norm2
        "g2": jnp.ones((1, dim), jnp.float32),
        "b2": jnp.zeros((1, dim), jnp.float32),
    }
    return params


if __name__ == "__main__":
    B, N, C = 2, 8, 32       # batch, tokens, embed dim (small demo shapes)
    num_heads = 4            # head_dim = 8

    key = jax.random.PRNGKey(0)
    kx, kp = jax.random.split(key)
    x = jax.random.normal(kx, (B, N, C), jnp.float32)
    params = init_params(kp, C, num_heads)

    out = res_post_block(x, params, num_heads=num_heads)
    out = jax.block_until_ready(out)

    ref = jax.block_until_ready(ref_forward(x, params, num_heads))
    # Tolerance accounts for bf16 MXU inputs + approx softmax reciprocal vs the f32 reference.
    np.testing.assert_allclose(np.asarray(out), np.asarray(ref), rtol=3e-2, atol=3e-2)

    print("KERNEL_OK")
</pallas_src>

<mosaic_0001>
module attributes {stable_mosaic.version = 11 : i64} {
  func.func @res_post_block_kernel(%arg0: i32, %arg1: memref<1x8x32xf32, #tpu.memory_space<vmem>>, %arg2: memref<32x96xbf16, #tpu.memory_space<vmem>>, %arg3: memref<32x32xbf16, #tpu.memory_space<vmem>>, %arg4: memref<1x32xf32, #tpu.memory_space<vmem>>, %arg5: memref<1x32xf32, #tpu.memory_space<vmem>>, %arg6: memref<1x32xf32, #tpu.memory_space<vmem>>, %arg7: memref<32x128xbf16, #tpu.memory_space<vmem>>, %arg8: memref<1x128xf32, #tpu.memory_space<vmem>>, %arg9: memref<128x32xbf16, #tpu.memory_space<vmem>>, %arg10: memref<1x32xf32, #tpu.memory_space<vmem>>, %arg11: memref<1x32xf32, #tpu.memory_space<vmem>>, %arg12: memref<1x32xf32, #tpu.memory_space<vmem>>, %arg13: memref<1x8x32xf32, #tpu.memory_space<vmem>>, %arg14: memref<8x32xf32, #tpu.memory_space<vmem>>) attributes {dimension_semantics = [#tpu.dimension_semantics<parallel>], iteration_bounds = array<i64: 2>, scalar_prefetch = 0 : i64, scratch_operands = 1 : i64, tpu.core_type = #tpu.core_type<tc>, window_params = [{transform_indices = @transform_0, window_bounds = array<i64: 1, 8, 32>}, {pipeline_mode = #tpu.pipeline_mode<synchronous>, transform_indices = @transform_1, window_bounds = array<i64: 32, 96>}, {pipeline_mode = #tpu.pipeline_mode<synchronous>, transform_indices = @transform_2, window_bounds = array<i64: 32, 32>}, {pipeline_mode = #tpu.pipeline_mode<synchronous>, transform_indices = @transform_3, window_bounds = array<i64: 1, 32>}, {pipeline_mode = #tpu.pipeline_mode<synchronous>, transform_indices = @transform_4, window_bounds = array<i64: 1, 32>}, {pipeline_mode = #tpu.pipeline_mode<synchronous>, transform_indices = @transform_5, window_bounds = array<i64: 1, 32>}, {pipeline_mode = #tpu.pipeline_mode<synchronous>, transform_indices = @transform_6, window_bounds = array<i64: 32, 128>}, {pipeline_mode = #tpu.pipeline_mode<synchronous>, transform_indices = @transform_7, window_bounds = array<i64: 1, 128>}, {pipeline_mode = #tpu.pipeline_mode<synchronous>, transform_indices = @transform_8, window_bounds = array<i64: 128, 32>}, {pipeline_mode = #tpu.pipeline_mode<synchronous>, transform_indices = @transform_9, window_bounds = array<i64: 1, 32>}, {pipeline_mode = #tpu.pipeline_mode<synchronous>, transform_indices = @transform_10, window_bounds = array<i64: 1, 32>}, {pipeline_mode = #tpu.pipeline_mode<synchronous>, transform_indices = @transform_11, window_bounds = array<i64: 1, 32>}, {transform_indices = @transform_12, window_bounds = array<i64: 1, 8, 32>}]} {
    %c0 = arith.constant 0 : index
    %c0_0 = arith.constant 0 : index
    %c0_1 = arith.constant 0 : index
    %0 = vector.load %arg1[%c0, %c0_0, %c0_1] : memref<1x8x32xf32, #tpu.memory_space<vmem>>, vector<1x8x32xf32>
    %1 = vector.shape_cast %0 : vector<1x8x32xf32> to vector<8x32xf32>
    %2 = arith.truncf %1 : vector<8x32xf32> to vector<8x32xbf16>
    %c0_2 = arith.constant 0 : index
    %c0_3 = arith.constant 0 : index
    %3 = vector.load %arg2[%c0_2, %c0_3] : memref<32x96xbf16, #tpu.memory_space<vmem>>, vector<32x96xbf16>
    %cst = arith.constant dense<0.000000e+00> : vector<8x96xf32>
    %4 = tpu.matmul %2, %3, %cst {dimension_numbers = #tpu.dot_dimension_numbers<[1], [0], [0], [1], [0, 0, 1, 1], [], []>} : vector<8x32xbf16>, vector<32x96xbf16>, vector<8x96xf32> -> vector<8x96xf32>
    %5 = vector.extract_strided_slice %4 {offsets = [0, 0], sizes = [8, 8], strides = [1, 1]} : vector<8x96xf32> to vector<8x8xf32>
    %cst_4 = arith.constant 0.353553385 : f32
    %6 = vector.broadcast %cst_4 : f32 to vector<8x8xf32>
    %7 = arith.mulf %5, %6 : vector<8x8xf32>
    %8 = arith.truncf %7 : vector<8x8xf32> to vector<8x8xbf16>
    %9 = vector.extract_strided_slice %4 {offsets = [0, 32], sizes = [8, 8], strides = [1, 1]} : vector<8x96xf32> to vector<8x8xf32>
    %10 = arith.truncf %9 : vector<8x8xf32> to vector<8x8xbf16>
    %11 = vector.extract_strided_slice %4 {offsets = [0, 64], sizes = [8, 8], strides = [1, 1]} : vector<8x96xf32> to vector<8x8xf32>
    %12 = arith.truncf %11 : vector<8x8xf32> to vector<8x8xbf16>
    %cst_5 = arith.constant dense<0.000000e+00> : vector<8x8xf32>
    %13 = tpu.matmul %8, %10, %cst_5 {dimension_numbers = #tpu.dot_dimension_numbers<[1], [1], [0], [0], [0, 0, 1, 0], [], []>} : vector<8x8xbf16>, vector<8x8xbf16>, vector<8x8xf32> -> vector<8x8xf32>
    %cst_6 = arith.constant dense<0xFF800000> : vector<8xf32>
    %14 = vector.multi_reduction <maximumf>, %13, %cst_6 [1] : vector<8x8xf32> to vector<8xf32>
    %15 = vector.shape_cast %14 : vector<8xf32> to vector<8x1xf32>
    %16 = vector.broadcast %15 : vector<8x1xf32> to vector<8x8xf32>
    %17 = arith.subf %13, %16 : vector<8x8xf32>
    %18 = math.exp %17 : vector<8x8xf32>
    %cst_7 = arith.constant dense<0.000000e+00> : vector<8xf32>
    %19 = vector.multi_reduction <add>, %18, %cst_7 [1] : vector<8x8xf32> to vector<8xf32>
    %20 = vector.shape_cast %19 : vector<8xf32> to vector<8x1xf32>
    %21 = tpu.reciprocal %20 {approx = true} : vector<8x1xf32> -> vector<8x1xf32>
    %22 = arith.truncf %18 : vector<8x8xf32> to vector<8x8xbf16>
    %cst_8 = arith.constant dense<0.000000e+00> : vector<8x8xf32>
    %23 = tpu.matmul %22, %12, %cst_8 {dimension_numbers = #tpu.dot_dimension_numbers<[1], [0], [0], [1], [0, 0, 1, 1], [], []>} : vector<8x8xbf16>, vector<8x8xbf16>, vector<8x8xf32> -> vector<8x8xf32>
    %24 = vector.broadcast %21 : vector<8x1xf32> to vector<8x8xf32>
    %25 = arith.mulf %23, %24 : vector<8x8xf32>
    %c0_9 = arith.constant 0 : index
    %c0_10 = arith.constant 0 : index
    %26 = vector.load %arg14[%c0_9, %c0_10] : memref<8x32xf32, #tpu.memory_space<vmem>>, vector<8x8xf32>
    tpu.vector_store %arg14[%c0_9, %c0_10], %25 {strides = array<i32>} : memref<8x32xf32, #tpu.memory_space<vmem>>, vector<8x8xf32>,
    %27 = vector.extract_strided_slice %4 {offsets = [0, 8], sizes = [8, 8], strides = [1, 1]} : vector<8x96xf32> to vector<8x8xf32>
    %cst_11 = arith.constant 0.353553385 : f32
    %28 = vector.broadcast %cst_11 : f32 to vector<8x8xf32>
    %29 = arith.mulf %27, %28 : vector<8x8xf32>
    %30 = arith.truncf %29 : vector<8x8xf32> to vector<8x8xbf16>
    %31 = vector.extract_strided_slice %4 {offsets = [0, 40], sizes = [8, 8], strides = [1, 1]} : vector<8x96xf32> to vector<8x8xf32>
    %32 = arith.truncf %31 : vector<8x8xf32> to vector<8x8xbf16>
    %33 = vector.extract_strided_slice %4 {offsets = [0, 72], sizes = [8, 8], strides = [1, 1]} : vector<8x96xf32> to vector<8x8xf32>
    %34 = arith.truncf %33 : vector<8x8xf32> to vector<8x8xbf16>
    %cst_12 = arith.constant dense<0.000000e+00> : vector<8x8xf32>
    %35 = tpu.matmul %30, %32, %cst_12 {dimension_numbers = #tpu.dot_dimension_numbers<[1], [1], [0], [0], [0, 0, 1, 0], [], []>} : vector<8x8xbf16>, vector<8x8xbf16>, vector<8x8xf32> -> vector<8x8xf32>
    %cst_13 = arith.constant dense<0xFF800000> : vector<8xf32>
    %36 = vector.multi_reduction <maximumf>, %35, %cst_13 [1] : vector<8x8xf32> to vector<8xf32>
    %37 = vector.shape_cast %36 : vector<8xf32> to vector<8x1xf32>
    %38 = vector.broadcast %37 : vector<8x1xf32> to vector<8x8xf32>
    %39 = arith.subf %35, %38 : vector<8x8xf32>
    %40 = math.exp %39 : vector<8x8xf32>
    %cst_14 = arith.constant dense<0.000000e+00> : vector<8xf32>
    %41 = vector.multi_reduction <add>, %40, %cst_14 [1] : vector<8x8xf32> to vector<8xf32>
    %42 = vector.shape_cast %41 : vector<8xf32> to vector<8x1xf32>
    %43 = tpu.reciprocal %42 {approx = true} : vector<8x1xf32> -> vector<8x1xf32>
    %44 = arith.truncf %40 : vector<8x8xf32> to vector<8x8xbf16>
    %cst_15 = arith.constant dense<0.000000e+00> : vector<8x8xf32>
    %45 = tpu.matmul %44, %34, %cst_15 {dimension_numbers = #tpu.dot_dimension_numbers<[1], [0], [0], [1], [0, 0, 1, 1], [], []>} : vector<8x8xbf16>, vector<8x8xbf16>, vector<8x8xf32> -> vector<8x8xf32>
    %46 = vector.broadcast %43 : vector<8x1xf32> to vector<8x8xf32>
    %47 = arith.mulf %45, %46 : vector<8x8xf32>
    %c0_16 = arith.constant 0 : index
    %c8 = arith.constant 8 : index
    %48 = vector.load %arg14[%c0_16, %c8] : memref<8x32xf32, #tpu.memory_space<vmem>>, vector<8x8xf32>
    tpu.vector_store %arg14[%c0_16, %c8], %47 {strides = array<i32>} : memref<8x32xf32, #tpu.memory_space<vmem>>, vector<8x8xf32>,
    %49 = vector.extract_strided_slice %4 {offsets = [0, 16], sizes = [8, 8], strides = [1, 1]} : vector<8x96xf32> to vector<8x8xf32>
    %cst_17 = arith.constant 0.353553385 : f32
    %50 = vector.broadcast %cst_17 : f32 to vector<8x8xf32>
    %51 = arith.mulf %49, %50 : vector<8x8xf32>
    %52 = arith.truncf %51 : vector<8x8xf32> to vector<8x8xbf16>
    %53 = vector.extract_strided_slice %4 {offsets = [0, 48], sizes = [8, 8], strides = [1, 1]} : vector<8x96xf32> to vector<8x8xf32>
    %54 = arith.truncf %53 : vector<8x8xf32> to vector<8x8xbf16>
    %55 = vector.extract_strided_slice %4 {offsets = [0, 80], sizes = [8, 8], strides = [1, 1]} : vector<8x96xf32> to vector<8x8xf32>
    %56 = arith.truncf %55 : vector<8x8xf32> to vector<8x8xbf16>
    %cst_18 = arith.constant dense<0.000000e+00> : vector<8x8xf32>
    %57 = tpu.matmul %52, %54, %cst_18 {dimension_numbers = #tpu.dot_dimension_numbers<[1], [1], [0], [0], [0, 0, 1, 0], [], []>} : vector<8x8xbf16>, vector<8x8xbf16>, vector<8x8xf32> -> vector<8x8xf32>
    %cst_19 = arith.constant dense<0xFF800000> : vector<8xf32>
    %58 = vector.multi_reduction <maximumf>, %57, %cst_19 [1] : vector<8x8xf32> to vector<8xf32>
    %59 = vector.shape_cast %58 : vector<8xf32> to vector<8x1xf32>
    %60 = vector.broadcast %59 : vector<8x1xf32> to vector<8x8xf32>
    %61 = arith.subf %57, %60 : vector<8x8xf32>
    %62 = math.exp %61 : vector<8x8xf32>
    %cst_20 = arith.constant dense<0.000000e+00> : vector<8xf32>
    %63 = vector.multi_reduction <add>, %62, %cst_20 [1] : vector<8x8xf32> to vector<8xf32>
    %64 = vector.shape_cast %63 : vector<8xf32> to vector<8x1xf32>
    %65 = tpu.reciprocal %64 {approx = true} : vector<8x1xf32> -> vector<8x1xf32>
    %66 = arith.truncf %62 : vector<8x8xf32> to vector<8x8xbf16>
    %cst_21 = arith.constant dense<0.000000e+00> : vector<8x8xf32>
    %67 = tpu.matmul %66, %56, %cst_21 {dimension_numbers = #tpu.dot_dimension_numbers<[1], [0], [0], [1], [0, 0, 1, 1], [], []>} : vector<8x8xbf16>, vector<8x8xbf16>, vector<8x8xf32> -> vector<8x8xf32>
    %68 = vector.broadcast %65 : vector<8x1xf32> to vector<8x8xf32>
    %69 = arith.mulf %67, %68 : vector<8x8xf32>
    %c0_22 = arith.constant 0 : index
    %c16 = arith.constant 16 : index
    %70 = vector.load %arg14[%c0_22, %c16] : memref<8x32xf32, #tpu.memory_space<vmem>>, vector<8x8xf32>
    tpu.vector_store %arg14[%c0_22, %c16], %69 {strides = array<i32>} : memref<8x32xf32, #tpu.memory_space<vmem>>, vector<8x8xf32>,
    %71 = vector.extract_strided_slice %4 {offsets = [0, 24], sizes = [8, 8], strides = [1, 1]} : vector<8x96xf32> to vector<8x8xf32>
    %cst_23 = arith.constant 0.353553385 : f32
    %72 = vector.broadcast %cst_23 : f32 to vector<8x8xf32>
    %73 = arith.mulf %71, %72 : vector<8x8xf32>
    %74 = arith.truncf %73 : vector<8x8xf32> to vector<8x8xbf16>
    %75 = vector.extract_strided_slice %4 {offsets = [0, 56], sizes = [8, 8], strides = [1, 1]} : vector<8x96xf32> to vector<8x8xf32>
    %76 = arith.truncf %75 : vector<8x8xf32> to vector<8x8xbf16>
    %77 = vector.extract_strided_slice %4 {offsets = [0, 88], sizes = [8, 8], strides = [1, 1]} : vector<8x96xf32> to vector<8x8xf32>
    %78 = arith.truncf %77 : vector<8x8xf32> to vector<8x8xbf16>
    %cst_24 = arith.constant dense<0.000000e+00> : vector<8x8xf32>
    %79 = tpu.matmul %74, %76, %cst_24 {dimension_numbers = #tpu.dot_dimension_numbers<[1], [1], [0], [0], [0, 0, 1, 0], [], []>} : vector<8x8xbf16>, vector<8x8xbf16>, vector<8x8xf32> -> vector<8x8xf32>
    %cst_25 = arith.constant dense<0xFF800000> : vector<8xf32>
    %80 = vector.multi_reduction <maximumf>, %79, %cst_25 [1] : vector<8x8xf32> to vector<8xf32>
    %81 = vector.shape_cast %80 : vector<8xf32> to vector<8x1xf32>
    %82 = vector.broadcast %81 : vector<8x1xf32> to vector<8x8xf32>
    %83 = arith.subf %79, %82 : vector<8x8xf32>
    %84 = math.exp %83 : vector<8x8xf32>
    %cst_26 = arith.constant dense<0.000000e+00> : vector<8xf32>
    %85 = vector.multi_reduction <add>, %84, %cst_26 [1] : vector<8x8xf32> to vector<8xf32>
    %86 = vector.shape_cast %85 : vector<8xf32> to vector<8x1xf32>
    %87 = tpu.reciprocal %86 {approx = true} : vector<8x1xf32> -> vector<8x1xf32>
    %88 = arith.truncf %84 : vector<8x8xf32> to vector<8x8xbf16>
    %cst_27 = arith.constant dense<0.000000e+00> : vector<8x8xf32>
    %89 = tpu.matmul %88, %78, %cst_27 {dimension_numbers = #tpu.dot_dimension_numbers<[1], [0], [0], [1], [0, 0, 1, 1], [], []>} : vector<8x8xbf16>, vector<8x8xbf16>, vector<8x8xf32> -> vector<8x8xf32>
    %90 = vector.broadcast %87 : vector<8x1xf32> to vector<8x8xf32>
    %91 = arith.mulf %89, %90 : vector<8x8xf32>
    %c0_28 = arith.constant 0 : index
    %c24 = arith.constant 24 : index
    %92 = vector.load %arg14[%c0_28, %c24] : memref<8x32xf32, #tpu.memory_space<vmem>>, vector<8x8xf32>
    tpu.vector_store %arg14[%c0_28, %c24], %91 {strides = array<i32>} : memref<8x32xf32, #tpu.memory_space<vmem>>, vector<8x8xf32>,
    %c0_29 = arith.constant 0 : index
    %c0_30 = arith.constant 0 : index
    %93 = vector.load %arg14[%c0_29, %c0_30] : memref<8x32xf32, #tpu.memory_space<vmem>>, vector<8x32xf32>
    %94 = arith.truncf %93 : vector<8x32xf32> to vector<8x32xbf16>
    %c0_31 = arith.constant 0 : index
    %c0_32 = arith.constant 0 : index
    %95 = vector.load %arg3[%c0_31, %c0_32] : memref<32x32xbf16, #tpu.memory_space<vmem>>, vector<32x32xbf16>
    %cst_33 = arith.constant dense<0.000000e+00> : vector<8x32xf32>
    %96 = tpu.matmul %94, %95, %cst_33 {dimension_numbers = #tpu.dot_dimension_numbers<[1], [0], [0], [1], [0, 0, 1, 1], [], []>} : vector<8x32xbf16>, vector<32x32xbf16>, vector<8x32xf32> -> vector<8x32xf32>
    %c0_34 = arith.constant 0 : index
    %c0_35 = arith.constant 0 : index
    %97 = vector.load %arg4[%c0_34, %c0_35] : memref<1x32xf32, #tpu.memory_space<vmem>>, vector<1x32xf32>
    %98 = vector.broadcast %97 : vector<1x32xf32> to vector<8x32xf32>
    %99 = arith.addf %96, %98 : vector<8x32xf32>
    %c0_36 = arith.constant 0 : index
    %c0_37 = arith.constant 0 : index
    %100 = vector.load %arg5[%c0_36, %c0_37] : memref<1x32xf32, #tpu.memory_space<vmem>>, vector<1x32xf32>
    %c0_38 = arith.constant 0 : index
    %c0_39 = arith.constant 0 : index
    %101 = vector.load %arg6[%c0_38, %c0_39] : memref<1x32xf32, #tpu.memory_space<vmem>>, vector<1x32xf32>
    %cst_40 = arith.constant dense<0.000000e+00> : vector<8xf32>
    %102 = vector.multi_reduction <add>, %99, %cst_40 [1] : vector<8x32xf32> to vector<8xf32>
    %103 = vector.shape_cast %102 : vector<8xf32> to vector<8x1xf32>
    %104 = arith.mulf %99, %99 : vector<8x32xf32>
    %cst_41 = arith.constant dense<0.000000e+00> : vector<8xf32>
    %105 = vector.multi_reduction <add>, %104, %cst_41 [1] : vector<8x32xf32> to vector<8xf32>
    %106 = vector.shape_cast %105 : vector<8xf32> to vector<8x1xf32>
    %cst_42 = arith.constant 3.125000e-02 : f32
    %107 = vector.broadcast %cst_42 : f32 to vector<8x1xf32>
    %108 = arith.mulf %103, %107 : vector<8x1xf32>
    %cst_43 = arith.constant 3.125000e-02 : f32
    %109 = vector.broadcast %cst_43 : f32 to vector<8x1xf32>
    %110 = arith.mulf %106, %109 : vector<8x1xf32>
    %111 = arith.mulf %108, %108 : vector<8x1xf32>
    %112 = arith.subf %110, %111 : vector<8x1xf32>
    %cst_44 = arith.constant 0.000000e+00 : f32
    %113 = vector.broadcast %cst_44 : f32 to vector<8x1xf32>
    %114 = arith.maximumf %112, %113 : vector<8x1xf32>
    %115 = vector.broadcast %108 : vector<8x1xf32> to vector<8x32xf32>
    %116 = arith.subf %99, %115 : vector<8x32xf32>
    %cst_45 = arith.constant 9.99999974E-6 : f32
    %117 = vector.broadcast %cst_45 : f32 to vector<8x1xf32>
    %118 = arith.addf %114, %117 : vector<8x1xf32>
    %119 = math.rsqrt %118 : vector<8x1xf32>
    %120 = vector.broadcast %119 : vector<8x1xf32> to vector<8x32xf32>
    %121 = arith.mulf %116, %120 : vector<8x32xf32>
    %122 = vector.broadcast %100 : vector<1x32xf32> to vector<8x32xf32>
    %123 = arith.mulf %121, %122 : vector<8x32xf32>
    %124 = vector.broadcast %101 : vector<1x32xf32> to vector<8x32xf32>
    %125 = arith.addf %123, %124 : vector<8x32xf32>
    %126 = arith.addf %1, %125 : vector<8x32xf32>
    %127 = arith.truncf %126 : vector<8x32xf32> to vector<8x32xbf16>
    %c0_46 = arith.constant 0 : index
    %c0_47 = arith.constant 0 : index
    %128 = vector.load %arg7[%c0_46, %c0_47] : memref<32x128xbf16, #tpu.memory_space<vmem>>, vector<32x128xbf16>
    %cst_48 = arith.constant dense<0.000000e+00> : vector<8x128xf32>
    %129 = tpu.matmul %127, %128, %cst_48 {dimension_numbers = #tpu.dot_dimension_numbers<[1], [0], [0], [1], [0, 0, 1, 1], [], []>} : vector<8x32xbf16>, vector<32x128xbf16>, vector<8x128xf32> -> vector<8x128xf32>
    %c0_49 = arith.constant 0 : index
    %c0_50 = arith.constant 0 : index
    %130 = vector.load %arg8[%c0_49, %c0_50] : memref<1x128xf32, #tpu.memory_space<vmem>>, vector<1x128xf32>
    %131 = vector.broadcast %130 : vector<1x128xf32> to vector<8x128xf32>
    %132 = arith.addf %129, %131 : vector<8x128xf32>
    %cst_51 = arith.constant 5.000000e-01 : f32
    %133 = vector.broadcast %cst_51 : f32 to vector<8x128xf32>
    %134 = arith.mulf %133, %132 : vector<8x128xf32>
    %cst_52 = arith.constant 0.707106769 : f32
    %135 = vector.broadcast %cst_52 : f32 to vector<8x128xf32>
    %136 = arith.mulf %132, %135 : vector<8x128xf32>
    %137 = math.erf %136 : vector<8x128xf32>
    %cst_53 = arith.constant 1.000000e+00 : f32
    %138 = vector.broadcast %cst_53 : f32 to vector<8x128xf32>
    %139 = arith.addf %138, %137 : vector<8x128xf32>
    %140 = arith.mulf %134, %139 : vector<8x128xf32>
    %141 = arith.truncf %140 : vector<8x128xf32> to vector<8x128xbf16>
    %c0_54 = arith.constant 0 : index
    %c0_55 = arith.constant 0 : index
    %142 = vector.load %arg9[%c0_54, %c0_55] : memref<128x32xbf16, #tpu.memory_space<vmem>>, vector<128x32xbf16>
    %cst_56 = arith.constant dense<0.000000e+00> : vector<8x32xf32>
    %143 = tpu.matmul %141, %142, %cst_56 {dimension_numbers = #tpu.dot_dimension_numbers<[1], [0], [0], [1], [0, 0, 1, 1], [], []>} : vector<8x128xbf16>, vector<128x32xbf16>, vector<8x32xf32> -> vector<8x32xf32>
    %c0_57 = arith.constant 0 : index
    %c0_58 = arith.constant 0 : index
    %144 = vector.load %arg10[%c0_57, %c0_58] : memref<1x32xf32, #tpu.memory_space<vmem>>, vector<1x32xf32>
    %145 = vector.broadcast %144 : vector<1x32xf32> to vector<8x32xf32>
    %146 = arith.addf %143, %145 : vector<8x32xf32>
    %c0_59 = arith.constant 0 : index
    %c0_60 = arith.constant 0 : index
    %147 = vector.load %arg11[%c0_59, %c0_60] : memref<1x32xf32, #tpu.memory_space<vmem>>, vector<1x32xf32>
    %c0_61 = arith.constant 0 : index
    %c0_62 = arith.constant 0 : index
    %148 = vector.load %arg12[%c0_61, %c0_62] : memref<1x32xf32, #tpu.memory_space<vmem>>, vector<1x32xf32>
    %cst_63 = arith.constant dense<0.000000e+00> : vector<8xf32>
    %149 = vector.multi_reduction <add>, %146, %cst_63 [1] : vector<8x32xf32> to vector<8xf32>
    %150 = vector.shape_cast %149 : vector<8xf32> to vector<8x1xf32>
    %151 = arith.mulf %146, %146 : vector<8x32xf32>
    %cst_64 = arith.constant dense<0.000000e+00> : vector<8xf32>
    %152 = vector.multi_reduction <add>, %151, %cst_64 [1] : vector<8x32xf32> to vector<8xf32>
    %153 = vector.shape_cast %152 : vector<8xf32> to vector<8x1xf32>
    %cst_65 = arith.constant 3.125000e-02 : f32
    %154 = vector.broadcast %cst_65 : f32 to vector<8x1xf32>
    %155 = arith.mulf %150, %154 : vector<8x1xf32>
    %cst_66 = arith.constant 3.125000e-02 : f32
    %156 = vector.broadcast %cst_66 : f32 to vector<8x1xf32>
    %157 = arith.mulf %153, %156 : vector<8x1xf32>
    %158 = arith.mulf %155, %155 : vector<8x1xf32>
    %159 = arith.subf %157, %158 : vector<8x1xf32>
    %cst_67 = arith.constant 0.000000e+00 : f32
    %160 = vector.broadcast %cst_67 : f32 to vector<8x1xf32>
    %161 = arith.maximumf %159, %160 : vector<8x1xf32>
    %162 = vector.broadcast %155 : vector<8x1xf32> to vector<8x32xf32>
    %163 = arith.subf %146, %162 : vector<8x32xf32>
    %cst_68 = arith.constant 9.99999974E-6 : f32
    %164 = vector.broadcast %cst_68 : f32 to vector<8x1xf32>
    %165 = arith.addf %161, %164 : vector<8x1xf32>
    %166 = math.rsqrt %165 : vector<8x1xf32>
    %167 = vector.broadcast %166 : vector<8x1xf32> to vector<8x32xf32>
    %168 = arith.mulf %163, %167 : vector<8x32xf32>
    %169 = vector.broadcast %147 : vector<1x32xf32> to vector<8x32xf32>
    %170 = arith.mulf %168, %169 : vector<8x32xf32>
    %171 = vector.broadcast %148 : vector<1x32xf32> to vector<8x32xf32>
    %172 = arith.addf %170, %171 : vector<8x32xf32>
    %173 = arith.addf %126, %172 : vector<8x32xf32>
    %c0_69 = arith.constant 0 : index
    %c0_70 = arith.constant 0 : index
    %c0_71 = arith.constant 0 : index
    %174 = vector.load %arg13[%c0_69, %c0_70, %c0_71] : memref<1x8x32xf32, #tpu.memory_space<vmem>>, vector<1x8x32xf32>
    %175 = vector.shape_cast %174 : vector<1x8x32xf32> to vector<8x32xf32>
    %176 = vector.shape_cast %173 : vector<8x32xf32> to vector<1x8x32xf32>
    tpu.vector_store %arg13[%c0_69, %c0_70, %c0_71], %176 {strides = array<i32>} : memref<1x8x32xf32, #tpu.memory_space<vmem>>, vector<1x8x32xf32>,
    return
  }
  func.func @transform_0(%arg0: i32) -> (i32, i32, i32) {
    %c0_i32 = arith.constant 0 : i32
    %c0_i32_0 = arith.constant 0 : i32
    %c0_i32_1 = arith.constant 0 : i32
    return %arg0, %c0_i32, %c0_i32_0 : i32, i32, i32
  }
  func.func @transform_1(%arg0: i32) -> (i32, i32) {
    %c0_i32 = arith.constant 0 : i32
    %c0_i32_0 = arith.constant 0 : i32
    %c0_i32_1 = arith.constant 0 : i32
    return %c0_i32, %c0_i32_0 : i32, i32
  }
  func.func @transform_2(%arg0: i32) -> (i32, i32) {
    %c0_i32 = arith.constant 0 : i32
    %c0_i32_0 = arith.constant 0 : i32
    %c0_i32_1 = arith.constant 0 : i32
    return %c0_i32, %c0_i32_0 : i32, i32
  }
  func.func @transform_3(%arg0: i32) -> (i32, i32) {
    %c0_i32 = arith.constant 0 : i32
    %c0_i32_0 = arith.constant 0 : i32
    %c0_i32_1 = arith.constant 0 : i32
    return %c0_i32, %c0_i32_0 : i32, i32
  }
  func.func @transform_4(%arg0: i32) -> (i32, i32) {
    %c0_i32 = arith.constant 0 : i32
    %c0_i32_0 = arith.constant 0 : i32
    %c0_i32_1 = arith.constant 0 : i32
    return %c0_i32, %c0_i32_0 : i32, i32
  }
  func.func @transform_5(%arg0: i32) -> (i32, i32) {
    %c0_i32 = arith.constant 0 : i32
    %c0_i32_0 = arith.constant 0 : i32
    %c0_i32_1 = arith.constant 0 : i32
    return %c0_i32, %c0_i32_0 : i32, i32
  }
  func.func @transform_6(%arg0: i32) -> (i32, i32) {
    %c0_i32 = arith.constant 0 : i32
    %c0_i32_0 = arith.constant 0 : i32
    %c0_i32_1 = arith.constant 0 : i32
    return %c0_i32, %c0_i32_0 : i32, i32
  }
  func.func @transform_7(%arg0: i32) -> (i32, i32) {
    %c0_i32 = arith.constant 0 : i32
    %c0_i32_0 = arith.constant 0 : i32
    %c0_i32_1 = arith.constant 0 : i32
    return %c0_i32, %c0_i32_0 : i32, i32
  }
  func.func @transform_8(%arg0: i32) -> (i32, i32) {
    %c0_i32 = arith.constant 0 : i32
    %c0_i32_0 = arith.constant 0 : i32
    %c0_i32_1 = arith.constant 0 : i32
    return %c0_i32, %c0_i32_0 : i32, i32
  }
  func.func @transform_9(%arg0: i32) -> (i32, i32) {
    %c0_i32 = arith.constant 0 : i32
    %c0_i32_0 = arith.constant 0 : i32
    %c0_i32_1 = arith.constant 0 : i32
    return %c0_i32, %c0_i32_0 : i32, i32
  }
  func.func @transform_10(%arg0: i32) -> (i32, i32) {
    %c0_i32 = arith.constant 0 : i32
    %c0_i32_0 = arith.constant 0 : i32
    %c0_i32_1 = arith.constant 0 : i32
    return %c0_i32, %c0_i32_0 : i32, i32
  }
  func.func @transform_11(%arg0: i32) -> (i32, i32) {
    %c0_i32 = arith.constant 0 : i32
    %c0_i32_0 = arith.constant 0 : i32
    %c0_i32_1 = arith.constant 0 : i32
    return %c0_i32, %c0_i32_0 : i32, i32
  }
  func.func @transform_12(%arg0: i32) -> (i32, i32, i32) {
    %c0_i32 = arith.constant 0 : i32
    %c0_i32_0 = arith.constant 0 : i32
    %c0_i32_1 = arith.constant 0 : i32
    return %arg0, %c0_i32, %c0_i32_0 : i32, i32, i32
  }
}

</mosaic_0001>

<bundles_post_ra>
// kernel: tpu_custom_call.1
= control target key start
LH: loop header
LB: loop body
LE: loop exit
PB: predicated region body
PF: predicated region fallthrough
CT: control target
= control target key end

     0   :  { %s1995_s0 = inlined_call_operand.vmem [shape: f32[2,8,32], index: 0, kind: input, shape index: {}]   ;;  %s1996_s1 = inlined_call_operand.vmem [shape: bf16[32,96], index: 1, kind: input, shape index: {}]   ;;  %s1997_s2 = inlined_call_operand.vmem [shape: bf16[32,32], index: 2, kind: input, shape index: {}]   ;;  %s1998_s3 = inlined_call_operand.vmem [shape: f32[1,32], index: 3, kind: input, shape index: {}]   ;;  %s1999_s4 = inlined_call_operand.vmem [shape: f32[1,32], index: 4, kind: input, shape index: {}]   ;;  %s2000_s5 = inlined_call_operand.vmem [shape: f32[1,32], index: 5, kind: input, shape index: {}]   ;;  %s2001_s6 = inlined_call_operand.vmem [shape: bf16[32,128], index: 6, kind: input, shape index: {}]   ;;  %s2002_s7 = inlined_call_operand.vmem [shape: f32[1,128], index: 7, kind: input, shape index: {}]   ;;  %s2003_s8 = inlined_call_operand.vmem [shape: bf16[128,32], index: 8, kind: input, shape index: {}]   ;;  %s2004_s9 = inlined_call_operand.vmem [shape: f32[1,32], index: 9, kind: input, shape index: {}]   ;;  %s2005_s10 = inlined_call_operand.vmem [shape: f32[1,32], index: 10, kind: input, shape index: {}]   ;;  %s2006_s11 = inlined_call_operand.vmem [shape: f32[1,32], index: 11, kind: input, shape index: {}]   ;;  %s2007_s12 = inlined_call_operand.hbm [shape: f32[2,8,32], index: 12, kind: output, shape index: {}]  }
   0x1   :  { %2008 = sst [smem:[#allocation6_spill]] %s1995_s0 }
   0x2   :  { %2009 = sst [smem:[#allocation7_spill]] %s1996_s1 }
   0x3   :  { %2010 = sst [smem:[#allocation8_spill]] %s1997_s2 }
   0x4   :  { %17 = vsyncpa [#allocation4], 0 }
   0x5   :  { %19 = vsyncpa [#allocation4 + $0x1], 0  ;;  %s1733_s21 = smov 0   ;;  %s1735_s22 = smov 0  }
   0x6   :  { %s1737_s23 = smov 0   ;;  %s1739_s24 = smov 0  }
   0x7 LB: > { %s1754_s25 = sadd.s32 4294967295, %s1649_s24   ;;  %s1328_s26 = sadd.s32 4294967294, %s1649_s24   ;;  %s1649_s24 = sphi %s1739_s24, %s2019_s24   ;;  %s1645_s23 = sphi %s1737_s23, %s2018_s23   ;;  %s1641_s22 = sphi %s1735_s22, %s2017_s22   ;;  %s1637_s21 = sphi %s1733_s21, %s2016_s21  }
   0x8   : > { %s1758_s27 = sadd.s32 1, %s1649_s24   ;;  %s289_s28 = sadd.s32 1, %s1645_s23 }
   0x9   : > { %s286_s29 = ssub.s32 %s1649_s24, %s1758_s27  ;;  %p299_p0 = scmp.ne.s32.totalorder %s1645_s23, %s1641_s22 }
   0xa   : > { %p287_p1 = scmp.eq.s32.totalorder %s286_s29, 0  ;;  %p300_p2 = scmp.eq.s32.totalorder %s1754_s25, 1 }
   0xb   : > { %p305_p3 = scmp.ne.s32.totalorder %s1641_s22, %s1637_s21  ;;  %p306_p4 = scmp.eq.s32.totalorder %s1328_s26, 1 }
   0xc   : > { %s1769_s30 = scalar_select %p287_p1, %s1645_s23, %s289_s28  }
   0xd   : > { %p1771_p5 = por %p300_p2, %p299_p0  ;;  %p1775_p6 = por %p306_p4, %p305_p3 }
   0xe   : > { %p1331_p7 = scmp.ge.s32.totalorder %s1649_s24, 1  ;;  %p364_p8 = scmp.lt.s32.totalorder %s1649_s24, 3 }
  0x10   : > { %p365_p9 = pnand %p1331_p7, %p364_p8 }
  0x11   : > { %s2013_s1 = sld [smem:[#allocation7_spill]] (!%p365_p9)  ;;  %v1651_v1 = vmov (!%p365_p9), 0.0   ;;  %vm1652_vm0 = vmmov (!%p365_p9), 0   ;;  %p405_p10 = scmp.lt.s32.totalorder (!%p365_p9), %s1754_s25, 1  ;;  %vm428_vm1 = vcmask (!%p365_p9), 261120   ;;  %vm478_vm2 = vcmask (!%p365_p9), 64512  }
  0x12   : > { %368 = sbr.rel (%p365_p9) target bundleno = 2156 (0x86c), region = 68  ;;  %1404 = vmatprep.subr.bf16.mxu0 (!%p365_p9), %v1651_v1  ;;  %1424 = vmatprep.subr.bf16.mxu1 (!%p365_p9), %v1651_v1  ;;  %s2014_s0 = sld [smem:[#allocation6_spill]] (!%p365_p9)  ;;  %vm541_vm3 = vcmask (!%p365_p9), 1043456   ;;  %vm702_vm4 = vcmask (!%p365_p9), 130112   ;;  %vm818_vm5 = vcmask (!%p365_p9), 195712   ;;  %vm934_vm6 = vcmask (!%p365_p9), 261312  }
  0x13   : > { %1408 = vmatprep.mubr.msk.bf16.mxu0 (!%p365_p9), %vm1652_vm0, %v1651_v1  ;;  %1426 = vmatprep.mubr.msk.bf16.mxu1 (!%p365_p9), %vm1652_vm0, %v1651_v1  ;;  %s1653_s15 = smov (!%p365_p9), 96   ;;  %s1654_s16 = smov (!%p365_p9), 120  }
  0x14   : > { %s1655_s17 = smov (!%p365_p9), 88   ;;  %s1656_s18 = smov (!%p365_p9), 80  }
  0x15   : > { %s1659_s26 = smov (!%p365_p9), 104   ;;  %s1660_s28 = smov (!%p365_p9), 56  }
  0x16   : > { %s2015_s2 = sld [smem:[#allocation8_spill]] (!%p365_p9) }
  0x17   : > { %v1551_v0 = vld [vmem:[%s2013_s1] sm:$0xff] (!%p365_p9)   ;;  %v1552_v2 = vld [vmem:[%s2013_s1 + $0x8] sm:$0xff] (!%p365_p9)  }
  0x18   : > { %1405 = vmatpush3.bf16.msra.mxu0 (!%p365_p9), %v1551_v0 }
  0x19   : > { %1406 = vmatprep.subr.bf16.mxu0 %v1651_v1  ;;  %s406_s19 = scalar_select %p405_p10, %s1754_s25, 1 }
  0x1b   : > { %s1333_s20 = sshll.u32 %s406_s19, 3  ;;  %s1657_s19 = smov 112  }
  0x1c   : > { %1407 = vmatpush3.bf16.msra.mxu0 %v1552_v2  ;;  %s408_s29 = scalar_lea.vmem %s2014_s0, %s1333_s20  ;;  %s1658_s20 = smov 72  }
  0x1d   : > { %1412 = vmatprep.subr.bf16.mxu0 %v1651_v1  ;;  %v1800_v3 = vld [vmem:[%s408_s29] sm:$0xff]  ;;  %s1661_s29 = smov 64  }
  0x1e   : > { %v411_v4 = vpack.c.bf16 %v1800_v3, %v1800_v3 }
  0x20   : > { %1409 = vmatmul.mubr.msk.bf16.vlgmr.msra.gmra.mrb[0].mxu0 %vm428_vm1, %v411_v4 }
  0x21   : > { %1414 = vmatprep.mubr.msk.bf16.mxu0 %vm1652_vm0, %v1651_v1 }
  0xf3   : > { %v466_v5 = vpop.f32.mrb[0].mxu0 }
  0xf4   : > { %v472_v6 = vmul.f32 0.35355338, %v466_v5  ;;  %v1807_v7 = vpack.c.bf16 %v466_v5, %v466_v5  ;;  %v1410_v8 = vpop.f32.mrb[1].mxu0 }
  0xf5   : > { %v469_v9 = vpop.f32.mrb[2].mxu0 }
  0xf6   : > { %v473_v10 = vpack.c.bf16 %v472_v6, %v472_v6  ;;  %476 = vrot.lane.b32.xlu0 %v1807_v7, %s1653_s15  ;;  %v1411_v11 = vpop.f32.mrb[3].mxu0  ;;  %s1662_s15 = smov 40  }
  0xf8   : > { %588 = vrot.lane.b32.xlu1 %v473_v10, %s1654_s16  ;;  %s1663_s16 = smov 48  }
  0xfa   : > { %590 = vrot.lane.b32.xlu0 %v1807_v7, %s1655_s17  ;;  %s1664_s17 = smov 8  }
  0xfc   : > { %706 = vrot.lane.b32.xlu1 %v1807_v7, %s1656_s18  ;;  %s402_s18 = sand.u32 1, %s1641_s22  }
  0xfe   : > { %704 = vrot.lane.b32.xlu0 %v473_v10, %s1657_s19  ;;  %s1332_s19 = sshll.u32 %s402_s18, 3 }
 0x100   : > { %822 = vrot.lane.b32.xlu1 %v1807_v7, %s1658_s20  ;;  %s1256_s20 = scalar_lea.sflag [#allocation4], %s402_s18 }
 0x102   : > { %820 = vrot.lane.b32.xlu0 %v473_v10, %s1659_s26 }
 0x168   : > { %v477_v12 = vpop.permute.xlu0 %476 }
 0x169   : > { %v483_v13 = vsel %vm478_vm2, %v477_v12, 0 }
 0x16a   : > { %1413 = vmatpush3.bf16.xpose.msra.mxu0 %v483_v13  ;;  %v589_v14 = vpop.permute.xlu1 %588 }
 0x16b   : > { %1418 = vmatprep.subr.bf16.mxu0 %v1651_v1 }
 0x16c   : > { %v591_v15 = vpop.permute.xlu0 %590 }
 0x16d   : > { %v596_v16 = vsel %vm478_vm2, %v591_v15, 0 }
 0x16e   : > { %1425 = vmatpush3.bf16.xpose.msra.mxu1 %v596_v16  ;;  %v707_v17 = vpop.permute.xlu1 %706 }
 0x16f   : > { %1436 = vmatprep.subr.bf16.mxu1 %v1651_v1  ;;  %v712_v18 = vsel %vm478_vm2, %v707_v17, 0 }
 0x170   : > { %v705_v20 = vpop.permute.xlu0 %704 }
 0x171   : > { %1415 = vmatmul.mubr.msk.bf16.vlgmr.msra.gmra.mrb[4].mxu0 %vm478_vm2, %v473_v10 }
 0x172   : > { %1420 = vmatprep.mubr.msk.bf16.mxu0 %vm1652_vm0, %v1651_v1  ;;  %v823_v19 = vpop.permute.xlu1 %822 }
 0x173   : > { %v828_v21 = vsel %vm478_vm2, %v823_v19, 0 }
 0x174   : > { %v821_v22 = vpop.permute.xlu0 %820 }
 0x175   : > { %1427 = vmatmul.mubr.msk.bf16.vlgmr.msra.gmra.mrb[0].mxu1 %vm478_vm2, %v589_v14 }
 0x176   : > { %1437 = vmatpush3.bf16.xpose.msra.mxu1 %v712_v18  ;;  %1438 = vmatprep.mubr.msk.bf16.mxu1 %vm1652_vm0, %v1651_v1 }
 0x177   : > { %1448 = vmatprep.subr.bf16.mxu1 %v1651_v1 }
 0x17d   : > { %1439 = vmatmul.mubr.msk.bf16.vlgmr.msra.gmra.mrb[4].mxu1 %vm478_vm2, %v705_v20 }
 0x17e   : > { %1449 = vmatpush3.bf16.xpose.msra.mxu1 %v828_v21  ;;  %1450 = vmatprep.mubr.msk.bf16.mxu1 %vm1652_vm0, %v1651_v1 }
 0x17f   : > { %1460 = vmatprep.subr.bf16.mxu1 %v1651_v1 }
 0x185   : > { %1451 = vmatmul.mubr.msk.bf16.vlgmr.msra.gmra.mrb[8].mxu1 %vm478_vm2, %v821_v22 }
 0x186   : > { %1464 = vmatprep.mubr.msk.bf16.mxu1 %vm1652_vm0, %v1651_v1 }
 0x244   : > { %v519_v23 = vpop.f32.mrb[4].mxu0 }
 0x245   : > { %v1416_v24 = vpop.f32.mrb[5].mxu0  ;;  %v525_v25 = vsel %vm478_vm2, %v519_v23, -inf }
 0x246   : > { %526 = vmax.xlane.f32.xlu1 %v525_v25  ;;  %v522_v26 = vpop.f32.mrb[6].mxu0 }
 0x247   : > { %v1417_v27 = vpop.f32.mrb[7].mxu0 }
 0x248   : > { %v632_v28 = vpop.f32.mrb[0].mxu1 }
 0x249   : > { %v1428_v29 = vpop.f32.mrb[1].mxu1  ;;  %v638_v30 = vsel %vm478_vm2, %v632_v28, -inf }
 0x24a   : > { %639 = vmax.xlane.f32.xlu0 %v638_v30  ;;  %v635_v31 = vpop.f32.mrb[2].mxu1  ;;  %v1553_v29 = vld [vmem:[%s2015_s2] sm:$0xff]  }
 0x24b   : > { %v1429_v32 = vpop.f32.mrb[3].mxu1  ;;  %1461 = vmatpush3.bf16.msra.mxu1 %v1553_v29 }
 0x24c   : > { %1462 = vmatprep.subr.bf16.mxu1 %v1651_v1 }
 0x250   : > { %v748_v33 = vpop.f32.mrb[4].mxu1 }
 0x251   : > { %v1440_v34 = vpop.f32.mrb[5].mxu1  ;;  %v754_v35 = vsel %vm478_vm2, %v748_v33, -inf }
 0x252   : > { %755 = vmax.xlane.f32.xlu0 %v754_v35  ;;  %v751_v36 = vpop.f32.mrb[6].mxu1  ;;  %v1554_v34 = vld [vmem:[%s2015_s2 + $0x8] sm:$0xff]  }
 0x253   : > { %v1441_v37 = vpop.f32.mrb[7].mxu1  ;;  %1463 = vmatpush3.bf16.msra.mxu1 %v1554_v34 }
 0x254   : > { %1476 = vmatprep.subr.bf16.mxu1 %v1651_v1 }
 0x257   : > { %649 = vrot.lane.b32.xlu1 %v1807_v7, %s1660_s28  ;;  %s1665_s28 = smov 16  }
 0x258   : > { %v864_v38 = vpop.f32.mrb[8].mxu1 }
 0x259   : > { %v1452_v39 = vpop.f32.mrb[9].mxu1  ;;  %v870_v42 = vsel %vm478_vm2, %v864_v38, -inf }
 0x25a   : > { %v867_v40 = vpop.f32.mrb[10].mxu1 }
 0x25b   : > { %v1453_v41 = vpop.f32.mrb[11].mxu1 }
 0x268   : > { %536 = vrot.lane.b32.xlu0 %v1807_v7, %s1661_s29  ;;  %s1666_s29 = smov 24  }
 0x26c   : > { %881 = vrot.lane.b32.xlu0 %v1807_v7, %s1662_s15  ;;  %s1367_s15 = sshll.u32 %s1754_s25, 7  ;;  %s1667_s25 = smov [#allocation3]  }
 0x26d   : > { %s1952_s2 = scalar_lea.hbm %s2007_s12, %s1367_s15 }
 0x27b   : > { %871 = vmax.xlane.f32.xlu1 %v870_v42 }
 0x28c   : > { %765 = vrot.lane.b32.xlu1 %v1807_v7, %s1663_s16  ;;  %s404_s16 = scalar_lea.vmem [#allocation3], %s1332_s19  ;;  %s1591_s19 = sshll.u32 %s1667_s25, 4  ;;  %s1592_s19 = int_to_ptr.vmem [resolvable:$false] %s1591_s19 }
 0x2d3   : > { %v527_v43 = vpop.xlane.xlu1 %526 }
 0x2d4   : > { %v528_v44 = vsub.f32 %v519_v23, %v527_v43 }
 0x2d6   : > { %v529_v45 = vmul.f32 1.442695, %v528_v44 }
 0x2d7   : > { %v640_v46 = vpop.xlane.xlu0 %639  ;;  %v650_v55 = vpop.permute.xlu1 %649 }
 0x2d8   : > { %v641_v47 = vsub.f32 %v632_v28, %v640_v46  ;;  %1565 = vpow2.f32 %v529_v45  ;;  %v655_v59 = vsel %vm541_vm3, %v650_v55, 0 }
 0x2da   : > { %v642_v48 = vmul.f32 1.442695, %v641_v47 }
 0x2dc   : > { %1567 = vpow2.f32 %v642_v48  ;;  %v1345_v48 = vld [vmem:[%s1998_s3] ss:$0 sm:$0xff] }
 0x2df   : > { %v756_v49 = vpop.xlane.xlu0 %755 }
 0x2e0   : > { %v757_v50 = vsub.f32 %v748_v33, %v756_v49 }
 0x2e2   : > { %v758_v51 = vmul.f32 1.442695, %v757_v50  ;;  %v1566_v52 = vpop.eup %1565 }
 0x2e3   : > { %v537_v53 = vpop.permute.xlu0 %536  ;;  %v535_v57 = vpack.c.bf16 %v1566_v52, %v1566_v52  ;;  %v531_v60 = vsel %vm478_vm2, %v1566_v52, 0.0 }
 0x2e4   : > { %1569 = vpow2.f32 %v758_v51  ;;  %v543_v54 = vsel %vm541_vm3, %v537_v53, 0 }
 0x2e5   : > { %1419 = vmatpush3.bf16.msra.mxu0 %v543_v54 }
 0x2e6   : > { %v1568_v56 = vpop.eup %1567  ;;  %1430 = vmatprep.subr.bf16.mxu0 %v1651_v1 }
 0x2e7   : > { %v644_v58 = vsel %vm478_vm2, %v1568_v56, 0.0  ;;  %v648_v62 = vpack.c.bf16 %v1568_v56, %v1568_v56  ;;  %v882_v7 = vpop.permute.xlu0 %881 }
 0x2e8   : > { %645 = vadd.xlane.f32.xlu1 %v644_v58  ;;  %1421 = vmatmul.mubr.msk.bf16.vlgmr.msra.gmra.mrb[8].mxu0 %vm478_vm2, %v535_v57  ;;  %v887_v9 = vsel %vm541_vm3, %v882_v7, 0  ;;  %v1555_v57 = vld [vmem:[%s2001_s6] sm:$0xff]   ;;  %v1556_v58 = vld [vmem:[%s2001_s6 + $0x8] sm:$0xff]  }
 0x2e9   : > { %1431 = vmatpush3.bf16.msra.mxu0 %v655_v59  ;;  %1432 = vmatprep.mubr.msk.bf16.mxu0 %vm1652_vm0, %v1651_v1  ;;  %v1557_v59 = vld [vmem:[%s2003_s8] sm:$0xff]  }
 0x2ea   : > { %1442 = vmatprep.subr.bf16.mxu0 %v1651_v1 }
 0x2ec   : > { %532 = vadd.xlane.f32.xlu1 %v531_v60  ;;  %v1558_v60 = vld [vmem:[%s2003_s8 + $0x8] sm:$0xff]  }
 0x2ee   : > { %v1570_v61 = vpop.eup %1569 }
 0x2ef   : > { %v760_v63 = vsel %vm478_vm2, %v1570_v61, 0.0  ;;  %v764_v8 = vpack.c.bf16 %v1570_v61, %v1570_v61  ;;  %v1559_v61 = vld [vmem:[%s2003_s8 + $0x10] sm:$0xff]  }
 0x2f0   : > { %761 = vadd.xlane.f32.xlu0 %v760_v63  ;;  %1433 = vmatmul.mubr.msk.bf16.vlgmr.msra.gmra.mrb[12].mxu0 %vm478_vm2, %v648_v62 }
 0x2f1   : > { %1444 = vmatprep.mubr.msk.bf16.mxu0 %vm1652_vm0, %v1651_v1 }
 0x308   : > { %v872_v0 = vpop.xlane.xlu1 %871 }
 0x309   : > { %v873_v2 = vsub.f32 %v864_v38, %v872_v0 }
 0x30b   : > { %v874_v4 = vmul.f32 1.442695, %v873_v2 }
 0x30c   : > { %v766_v5 = vpop.permute.xlu1 %765 }
 0x30d   : > { %1571 = vpow2.f32 %v874_v4  ;;  %v771_v6 = vsel %vm541_vm3, %v766_v5, 0 }
 0x30e   : > { %1443 = vmatpush3.bf16.msra.mxu0 %v771_v6 }
 0x30f   : > { %1454 = vmatprep.subr.bf16.mxu0 %v1651_v1 }
 0x311   : > { %1445 = vmatmul.mubr.msk.bf16.vlgmr.msra.gmra.mrb[16].mxu0 %vm478_vm2, %v764_v8 }
 0x312   : > { %1455 = vmatpush3.bf16.msra.mxu0 %v887_v9  ;;  %1456 = vmatprep.mubr.msk.bf16.mxu0 %vm1652_vm0, %v1651_v1 }
 0x313   : > { %1468 = vmatprep.subr.bf16.mxu0 %v1651_v1 }
 0x317   : > { %v1572_v10 = vpop.eup %1571 }
 0x318   : > { %v876_v11 = vsel %vm478_vm2, %v1572_v10, 0.0  ;;  %v880_v12 = vpack.c.bf16 %v1572_v10, %v1572_v10  ;;  %v1349_v10 = vld [vmem:[%s1999_s4] ss:$0 sm:$0xff] }
 0x319   : > { %877 = vadd.xlane.f32.xlu0 %v876_v11 }
 0x31a   : > { %1457 = vmatmul.mubr.msk.bf16.vlgmr.msra.gmra.mrb[20].mxu0 %vm478_vm2, %v880_v12  ;;  %v1350_v12 = vld [vmem:[%s2000_s5] ss:$0 sm:$0xff] }
 0x31b   : > { %1472 = vmatprep.mubr.msk.bf16.mxu0 %vm1652_vm0, %v1651_v1  ;;  %1469 = vmatpush3.bf16.msra.mxu0 %v1555_v57 }
 0x31c   : > { %1470 = vmatprep.subr.bf16.mxu0 %v1651_v1 }
 0x31f   : > { %1471 = vmatpush3.bf16.msra.mxu0 %v1556_v58 }
 0x375   : > { %v646_v13 = vpop.xlane.xlu1 %645 }
 0x379   : > { %v533_v14 = vpop.xlane.xlu1 %532 }
 0x37a   : > { %1573 = vrcp.f32 %v533_v14 }
 0x37b   : > { %1575 = vrcp.f32 %v646_v13 }
 0x37d   : > { %v762_v27 = vpop.xlane.xlu0 %761 }
 0x37e   : > { %1577 = vrcp.f32 %v762_v27 }
 0x384   : > { %v1574_v15 = vpop.eup %1573 }
 0x385   : > { %v1576_v21 = vpop.eup %1575 }
 0x388   : > { %v1578_v30 = vpop.eup %1577 }
 0x3a6   : > { %v878_v28 = vpop.xlane.xlu0 %877 }
 0x3a7   : > { %1579 = vrcp.f32 %v878_v28 }
 0x3b1   : > { %v1580_v37 = vpop.eup %1579 }
 0x3bb   : > { %v579_v16 = vpop.f32.mrb[8].mxu0 }
 0x3bc   : > { %v585_v17 = vmul.f32 %v1574_v15, %v579_v16  ;;  %v1422_v18 = vpop.f32.mrb[9].mxu0 }
 0x3bd   : > { %v582_v19 = vpop.f32.mrb[10].mxu0  ;;  %v1561_v18 = vld [vmem:[%s2003_s8 + $0x20] sm:$0xff]  }
 0x3be   : > { %586 = vst.msk [vmem:[#allocation2] sm:$0xff] %vm478_vm2, %v585_v17  ;;  %v1423_v20 = vpop.f32.mrb[11].mxu0  ;;  %v1560_v17 = vld [vmem:[%s2003_s8 + $0x18] sm:$0xff]   ;;  %v1563_v19 = vld [vmem:[%s2003_s8 + $0x30] sm:$0xff]  }
 0x3bf   : > { %v1564_v20 = vld [vmem:[%s2003_s8 + $0x38] sm:$0xff]  }
 0x3c3   : > { %v691_v22 = vpop.f32.mrb[12].mxu0 }
 0x3c4   : > { %v697_v23 = vmul.f32 %v1576_v21, %v691_v22  ;;  %v1434_v24 = vpop.f32.mrb[13].mxu0  ;;  %v1351_v21 = vld [vmem:[%s2002_s7] ss:$0 sm:$0xff] }
 0x3c5   : > { %v694_v25 = vpop.f32.mrb[14].mxu0 }
 0x3c6   : > { %699 = vrot.lane.b32.xlu0 %v697_v23, %s1664_s17  ;;  %v1435_v26 = vpop.f32.mrb[15].mxu0  ;;  %s1269_s17 = sshll.u32 %s404_s16, 4  ;;  %s1954_s17 = int_to_ptr.vmem [resolvable:$true] %s1269_s17 }
 0x3c7   : > { %s1587_s26 = scalar_lea.vmem %s1954_s17, 128  ;;  %p1594_p0 = scmp.lt.s32.totalorder %s1954_s17, %s1592_s19 }
 0x3c8   : > { %p1588_p11 = scmp.ne.s32.totalorder %s1954_s17, %s1587_s26 }
 0x3ca   : > { %p1589_p12 = pnand %p1588_p11, %p1771_p5 }
 0x3cc   : > { %p1590_p13 = pneg %p1589_p12 }
 0x3e4   : > { %v807_v31 = vpop.f32.mrb[16].mxu0 }
 0x3e5   : > { %v813_v32 = vmul.f32 %v1578_v30, %v807_v31  ;;  %v1446_v33 = vpop.f32.mrb[17].mxu0 }
 0x3e6   : > { %v810_v35 = vpop.f32.mrb[18].mxu0 }
 0x3e7   : > { %815 = vrot.lane.b32.xlu1 %v813_v32, %s1665_s28  ;;  %v1447_v36 = vpop.f32.mrb[19].mxu0  ;;  %v1355_v32 = vld [vmem:[%s2004_s9] ss:$0 sm:$0xff]  ;;  %s1593_s28 = scalar_lea.vmem %s1592_s19, 256 }
 0x3e8   : > { %p1595_p1 = scmp.lt.s32.totalorder %s1593_s28, %s1587_s26 }
 0x3ea   : > { %p1596_p2 = por %p1595_p1, %p1594_p0 }
 0x3ec   : > { %p1597_p3 = pnand %p1596_p2, %p1590_p13 }
 0x3ed   : > { %v923_v38 = vpop.f32.mrb[20].mxu0 }
 0x3ee   : > { %v929_v39 = vmul.f32 %v1580_v37, %v923_v38  ;;  %v1458_v40 = vpop.f32.mrb[21].mxu0 }
 0x3ef   : > { %v926_v41 = vpop.f32.mrb[22].mxu0 }
 0x3f0   : > { %931 = vrot.lane.b32.xlu1 %v929_v39, %s1666_s29  ;;  %v1459_v42 = vpop.f32.mrb[23].mxu0 }
 0x438   : > { %v700_v43 = vpop.permute.xlu0 %699 }
 0x439   : > { %703 = vst.msk [vmem:[#allocation2] sm:$0xff] %vm702_vm4, %v700_v43 }
 0x459   : > { %v816_v44 = vpop.permute.xlu1 %815 }
 0x45a   : > { %819 = vst.msk [vmem:[#allocation2] sm:$0xff] %vm818_vm5, %v816_v44 }
 0x462   : > { %v932_v45 = vpop.permute.xlu1 %931 }
 0x463   : > { %935 = vst.msk [vmem:[#allocation2] sm:$0xff] %vm934_vm6, %v932_v45 }
 0x46a   : > { %v936_v46 = vld [vmem:[#allocation2] sm:$0xff] }
 0x46b   : > { %v937_v47 = vpack.c.bf16 %v936_v46, %v936_v46 }
 0x46d   : > { %1465 = vmatmul.mubr.msk.bf16.vlgmr.msra.gmra.mrb[12].mxu1 %vm428_vm1, %v937_v47 }
 0x46e   : > { %1492 = vmatprep.mubr.msk.bf16.mxu1 %vm1652_vm0, %v1651_v1  ;;  %1477 = vmatpush3.bf16.msra.mxu1 %v1557_v59 }
 0x46f   : > { %1478 = vmatprep.subr.bf16.mxu1 %v1651_v1 }
 0x472   : > { %1479 = vmatpush3.bf16.msra.mxu1 %v1558_v60 }
 0x473   : > { %1480 = vmatprep.subr.bf16.mxu1 %v1651_v1 }
 0x476   : > { %1481 = vmatpush3.bf16.msra.mxu1 %v1559_v61 }
 0x477   : > { %1482 = vmatprep.subr.bf16.mxu1 %v1651_v1 }
 0x47a   : > { %1483 = vmatpush3.bf16.msra.mxu1 %v1560_v17 }
 0x47b   : > { %1484 = vmatprep.subr.bf16.mxu1 %v1651_v1 }
 0x47e   : > { %1485 = vmatpush3.bf16.msra.mxu1 %v1561_v18 }
 0x47f   : > { %1486 = vmatprep.subr.bf16.mxu1 %v1651_v1 }
 0x540   : > { %v998_v49 = vpop.f32.mrb[12].mxu1 }
 0x541   : > { %v999_v50 = vadd.f32 %v1345_v48, %v998_v49  ;;  %v1466_v51 = vpop.f32.mrb[13].mxu1 }
 0x542   : > { %v1001_v52 = vpop.f32.mrb[14].mxu1  ;;  %v1364_v51 = vld [vmem:[%s2005_s10] ss:$0 sm:$0xff] }
 0x543   : > { %v1467_v53 = vpop.f32.mrb[15].mxu1  ;;  %v1006_v54 = vsel %vm428_vm1, %v999_v50, 0.0  ;;  %v1009_v55 = vmul.f32 %v999_v50, %v999_v50 }
 0x544   : > { %1007 = vadd.xlane.f32.xlu0 %v1006_v54  ;;  %v1365_v53 = vld [vmem:[%s2006_s11] ss:$0 sm:$0xff] }
 0x545   : > { %v1010_v56 = vsel %vm428_vm1, %v1009_v55, 0.0 }
 0x546   : > { %1011 = vadd.xlane.f32.xlu1 %v1010_v56 }
 0x5d1   : > { %v1008_v62 = vpop.xlane.xlu0 %1007 }
 0x5d2   : > { %v1013_v63 = vmul.f32 0.03125, %v1008_v62 }
 0x5d3   : > { %v1012_v0 = vpop.xlane.xlu1 %1011 }
 0x5d4   : > { %v1015_v2 = vmul.f32 %v1013_v63, %v1013_v63  ;;  %v1014_v4 = vmul.f32 0.03125, %v1012_v0  ;;  %v1018_v8 = vsub.f32 %v999_v50, %v1013_v63 }
 0x5d6   : > { %v1016_v5 = vsub.f32 %v1014_v4, %v1015_v2 }
 0x5d8   : > { %v1017_v6 = vmax.f32 %v1016_v5, 0.0 }
 0x5da   : > { %v1019_v7 = vadd.f32 1e-05, %v1017_v6 }
 0x5dc   : > { %1581 = vrsqrt.f32 %v1019_v7 }
 0x5e6   : > { %v1582_v9 = vpop.eup %1581 }
 0x5e7   : > { %v1021_v11 = vmul.f32 %v1582_v9, %v1018_v8 }
 0x5e9   : > { %v1028_v13 = vmul.f32 %v1349_v10, %v1021_v11 }
 0x5eb   : > { %v1035_v14 = vadd.f32 %v1350_v12, %v1028_v13 }
 0x5ed   : > { %v1908_v15 = vadd.f32 %v1035_v14, %v1800_v3  ;;  %v1562_v3 = vld [vmem:[%s2003_s8 + $0x28] sm:$0xff]  }
 0x5ee   : > { %1487 = vmatpush3.bf16.msra.mxu1 %v1562_v3 }
 0x5ef   : > { %v1037_v16 = vpack.c.bf16 %v1908_v15, %v1908_v15  ;;  %1488 = vmatprep.subr.bf16.mxu1 %v1651_v1 }
 0x5f1   : > { %1473 = vmatmul.mubr.msk.bf16.vlgmr.msra.gmra.mrb[24].mxu0 %vm428_vm1, %v1037_v16 }
 0x5f2   : > { %1489 = vmatpush3.bf16.msra.mxu1 %v1563_v19 }
 0x5f3   : > { %1490 = vmatprep.subr.bf16.mxu1 %v1651_v1 }
 0x5f6   : > { %1491 = vmatpush3.bf16.msra.mxu1 %v1564_v20 }
 0x6c4   : > { %v1098_v22 = vpop.f32.mrb[24].mxu0 }
 0x6c5   : > { %v1099_v23 = vadd.f32 %v1351_v21, %v1098_v22  ;;  %v1474_v24 = vpop.f32.mrb[25].mxu0 }
 0x6c6   : > { %v1101_v25 = vpop.f32.mrb[26].mxu0 }
 0x6c7   : > { %v1105_v26 = vmul.f32 0.70710677, %v1099_v23  ;;  %v1475_v27 = vpop.f32.mrb[27].mxu0  ;;  %v1104_v29 = vmul.f32 0.5, %v1099_v23 }
 0x6c9   : > { %1583 = verf.f32 %v1105_v26 }
 0x6d3   : > { %v1584_v28 = vpop.eup %1583 }
 0x6d4   : > { %v1107_v30 = vadd.f32 1.0, %v1584_v28 }
 0x6d6   : > { %v1108_v1 = vmul.f32 %v1107_v30, %v1104_v29 }
 0x6d8   : > { %v1109_v31 = vpack.c.bf16 %v1108_v1, %v1108_v1 }
 0x6da   : > { %1493 = vmatmul.mubr.bf16.vlgmr.msra.gmra.mrb[16].mxu1 %v1109_v31 }
 0x7ad   : > { %v1215_v33 = vpop.f32.mrb[16].mxu1 }
 0x7ae   : > { %v1216_v34 = vadd.f32 %v1355_v32, %v1215_v33  ;;  %v1494_v35 = vpop.f32.mrb[17].mxu1 }
 0x7af   : > { %v1218_v36 = vpop.f32.mrb[18].mxu1 }
 0x7b0   : > { %v1495_v37 = vpop.f32.mrb[19].mxu1  ;;  %v1223_v38 = vsel %vm428_vm1, %v1216_v34, 0.0  ;;  %v1226_v39 = vmul.f32 %v1216_v34, %v1216_v34 }
 0x7b1   : > { %1224 = vadd.xlane.f32.xlu0 %v1223_v38 }
 0x7b2   : > { %v1227_v40 = vsel %vm428_vm1, %v1226_v39, 0.0 }
 0x7b5   : > { %1228 = vadd.xlane.f32.xlu0 %v1227_v40 }
 0x83e   : > { %v1225_v41 = vpop.xlane.xlu0 %1224 }
 0x83f   : > { %v1230_v42 = vmul.f32 0.03125, %v1225_v41 }
 0x841   : > { %v1232_v44 = vmul.f32 %v1230_v42, %v1230_v42  ;;  %v1235_v49 = vsub.f32 %v1216_v34, %v1230_v42 }
 0x842   : > { %v1229_v43 = vpop.xlane.xlu0 %1228 }
 0x843   : > { %v1231_v45 = vmul.f32 0.03125, %v1229_v43 }
 0x845   : > { %v1233_v46 = vsub.f32 %v1231_v45, %v1232_v44 }
 0x847   : > { %v1234_v47 = vmax.f32 %v1233_v46, 0.0 }
 0x849   : > { %v1236_v48 = vadd.f32 1e-05, %v1234_v47 }
 0x84b   : > { %1585 = vrsqrt.f32 %v1236_v48 }
 0x855   : > { %v1586_v50 = vpop.eup %1585 }
 0x856   : > { %v1238_v52 = vmul.f32 %v1586_v50, %v1235_v49 }
 0x858   : > { %v1245_v54 = vmul.f32 %v1364_v51, %v1238_v52 }
 0x85a   : > { %v1252_v55 = vadd.f32 %v1365_v53, %v1245_v54 }
 0x85c   : > { %v1253_v56 = vadd.f32 %v1252_v55, %v1908_v15 }
 0x85e   : > { %1254 = vst.msk [vmem:[%s404_s16] sm:$0xff] %vm428_vm1, %v1253_v56 }
 0x85f   : > { %1600 = shalt.err (!%p1597_p3)
}
 0x860   : > { %s1601_s0 = scalar_lea.hbm %s1952_s2, 128  ;;  %s1605_s29 = scalar_lea.hbm %s2007_s12, 256 }
 0x861   : > { %p1602_p4 = scmp.ne.s32.totalorder %s1952_s2, %s1601_s0  ;;  %p1606_p9 = scmp.lt.u32.totalorder %s1952_s2, %s2007_s12 }
 0x862   : > { %p1607_p10 = scmp.lt.u32.totalorder %s1605_s29, %s1601_s0  ;;  %p1609_p12 = scmp.lt.u32.totalorder %s1601_s0, %s1952_s2 }
 0x863   : > { %p1603_p7 = pnand %p1602_p4, %p1771_p5 }
 0x864   : > { %p1608_p11 = por %p1607_p10, %p1606_p9 }
 0x865   : > { %p1604_p8 = pneg %p1603_p7 }
 0x866   : > { %p1610_p13 = por %p1609_p12, %p1608_p11 }
 0x868   : > { %p1611_p0 = pnand %p1610_p13, %p1604_p8 }
 0x86a   : > { %1614 = shalt.err (!%p1611_p0)
}
 0x86b   : > { %1496 = dma.vmem_to_hbm [thread:$0]  (%p1771_p5), %s1954_s17, 128, %s1952_s2, %s1256_s20  }
 0x86c PF: > { %p1502_p1 = scmp.ge.s32.totalorder %s1649_s24, 2  ;;  %s1281_s26 = sand.u32 1, %s1637_s21  }
 0x86d   : > { %s1282_s25 = scalar_lea.sflag [#allocation4], %s1281_s26 }
 0x86e   : > { %p1499_p2 = pnand %p1502_p1, %p1775_p6 }
 0x870   : > { %1632 = dma.done.wait (!%p1499_p2), %s1282_s25, 128  }
 0x871   : > { %1634 = vsyncadd (!%p1499_p2), %s1282_s25, 4294967168  ;;  %p22_p3 = scmp.ge.s32.totalorder %s1758_s27, 4   ;;  %s2016_s21 = smov %s1641_s22 }
 0x872   : > { %s2017_s22 = smov %s1645_s23  ;;  %s2018_s23 = smov %s1769_s30 }
 0x873   : > { %s2019_s24 = smov %s1758_s27  ;;  %24 = sbr.rel (!%p22_p3) target bundleno = 7 (0x7), region = 103 }
 0x87a   :  { %1287 = vsyncpa [#allocation4], 1 }
 0x87b   :  { %1289 = vsyncpa [#allocation4 + $0x1], 1 }

</bundles_post_ra>
